<compile_context>
chip_gen: v7x
topology: tpu7x:2x2x1
jax: 0.10.0
libtpu: 0.0.40
codegen_flags: <defaults>
</compile_context>

<pallas_src>
from functools import partial

import jax
import jax.numpy as jnp
from jax import lax
from jax.experimental import pallas as pl
from jax.experimental.pallas import tpu as pltpu

LANE = 128                 # vreg lane width; slabs are viewed as (R, 128)
BLOCK_R = 8192             # rows per tiled block -> 8192*128*4 B = 4 MiB f32 blocks

# ---- generation-aware VMEM budgets -----------------------------------------------
try:
    _VMEM_CAP = int(pltpu.get_tpu_info().vmem_capacity_bytes)
    if _VMEM_CAP <= 0:
        _VMEM_CAP = 64 * 1024 * 1024
except Exception:  # conservative fallback (v7x-sized VMEM)
    _VMEM_CAP = 64 * 1024 * 1024

_FUSED_VMEM_LIMIT = min(int(_VMEM_CAP * 0.6), 80 * 1024 * 1024)
# fused path budget ~5x the f32 slab (in + out double-buffered + temps)
_FUSED_MAX_F32_BYTES = min(_FUSED_VMEM_LIMIT // 5, 24 * 1024 * 1024)
# tiled path: 2x4 MiB in + 2x4 MiB out + temps comfortably under this
_TILED_VMEM_LIMIT = min(40 * 1024 * 1024, _FUSED_VMEM_LIMIT)

_SMEM_SPEC = pl.BlockSpec(memory_space=pltpu.MemorySpace.SMEM)


def _const_index_map(ndim):
    zeros = (0,) * ndim

    def im(i):
        return zeros

    return im


# -----------------------------------------------------------------------------------
# Fused path: whole slab resident in VMEM, one HBM read + one HBM write (2N traffic).
# -----------------------------------------------------------------------------------
def _fused_kernel(x_ref, o_ref, norm_ref):
    xf = x_ref[...].astype(jnp.float32)
    ss = jnp.sum(xf * xf)
    norm = jnp.sqrt(ss)
    norm_ref[0, 0] = norm
    inv = 1.0 / norm                      # exact (not approx) to hold 1e-6 rtol
    # Re-load x instead of reusing `xf` so Mosaic does not need to keep a slab-sized
    # f32 temporary live across the reduction (matters for sub-f32 inputs).
    o_ref[...] = (x_ref[...].astype(jnp.float32) * inv).astype(o_ref.dtype)
    # TODO(synk): for very large fused slabs a phased (accumulate/scale) block grid
    # with a whole-slab VMEM scratch would overlap the in/out DMAs with compute.


def _fused_div(xv, out_dtype):
    im = _const_index_map(xv.ndim)
    y, norm = pl.pallas_call(
        _fused_kernel,
        out_shape=(jax.ShapeDtypeStruct(xv.shape, out_dtype),
                   jax.ShapeDtypeStruct((1, 1), jnp.float32)),
        grid_spec=pltpu.PrefetchScalarGridSpec(
            num_scalar_prefetch=0,
            grid=(1,),
            in_specs=[pl.BlockSpec(xv.shape, im)],
            out_specs=(pl.BlockSpec(xv.shape, im), _SMEM_SPEC),
        ),
        compiler_params=pltpu.CompilerParams(
            dimension_semantics=("arbitrary",),
            vmem_limit_bytes=_FUSED_VMEM_LIMIT),
    )(xv)
    return y, norm[0, 0]


# -----------------------------------------------------------------------------------
# Tiled path, pass 1: per-core partial sum of squares.
#   grid = (2 cores [parallel], blocks per core [arbitrary])
#   accumulator = a (1,1,128) output block per core (output-as-accumulator), fed by a
#   sublane reduce of each 4 MiB block; ragged / phantom blocks masked via iota.
# -----------------------------------------------------------------------------------
def _make_sumsq_kernel(n_rows, nt_half, needs_mask):
    def kernel(x_ref, psum_ref):
        core = pl.program_id(0)
        step = pl.program_id(1)

        @pl.when(step == 0)
        def _():
            psum_ref[...] = jnp.zeros_like(psum_ref)

        xf = x_ref[...].astype(jnp.float32)
        if needs_mask:
            # Mask rows past the true row count (partial last block and the phantom
            # block a core gets when the block count is odd).  Uses the *unclamped*
            # block index so a phantom block contributes exactly zero.
            start = (core * nt_half + step) * BLOCK_R
            row = lax.broadcasted_iota(jnp.int32, xf.shape, 0)
            xf = jnp.where(start + row < n_rows, xf, 0.0)

        # Sublane (XLU) partial reduce -> tiny per-core accumulator; avoids reading
        # and writing a block-sized accumulator every step.
        psum_ref[...] += jnp.sum(xf * xf, axis=0, keepdims=True)[None]

    return kernel


# -----------------------------------------------------------------------------------
# Tiled path, pass 2: pure multiply by the precomputed inverse norm (SMEM-resident).
# -----------------------------------------------------------------------------------
def _scale_kernel(inv_ref, x_ref, o_ref):
    o_ref[...] = (x_ref[...].astype(jnp.float32) * inv_ref[0, 0]).astype(o_ref.dtype)


def _tiled_div_2d(x2d, out_dtype):
    n_rows = x2d.shape[0]
    nt = pl.cdiv(n_rows, BLOCK_R)
    nt_half = (nt + 1) // 2          # blocks per core (2-way split, v7x megacore)
    needs_mask = (n_rows % BLOCK_R != 0) or (nt % 2 == 1)

    def in_map(core, step):
        # Clamp so a phantom block (odd nt) reads a valid window; its contribution is
        # zeroed by the in-kernel row mask.
        return (jnp.minimum(core * nt_half + step, nt - 1), 0)

    def out_map(core, step):
        return (core, 0, 0)

    partials = pl.pallas_call(
        _make_sumsq_kernel(n_rows, nt_half, needs_mask),
        out_shape=jax.ShapeDtypeStruct((2, 1, LANE), jnp.float32),
        grid_spec=pltpu.PrefetchScalarGridSpec(
            num_scalar_prefetch=0,
            grid=(2, nt_half),
            in_specs=[pl.BlockSpec((BLOCK_R, LANE), in_map)],
            out_specs=pl.BlockSpec((1, 1, LANE), out_map),
        ),
        compiler_params=pltpu.CompilerParams(
            dimension_semantics=("parallel", "arbitrary"),
            vmem_limit_bytes=_TILED_VMEM_LIMIT),
    )(x2d)

    # Tiny (256-element) epilogue combining the per-core partials.
    ss = jnp.sum(partials)
    norm = jnp.sqrt(ss)
    inv = jnp.reshape(1.0 / norm, (1, 1))

    y2d = pl.pallas_call(
        _scale_kernel,
        out_shape=jax.ShapeDtypeStruct((n_rows, LANE), out_dtype),
        grid_spec=pltpu.PrefetchScalarGridSpec(
            num_scalar_prefetch=0,
            grid=(nt,),
            in_specs=[_SMEM_SPEC,
                      pl.BlockSpec((BLOCK_R, LANE), lambda step: (step, 0))],
            out_specs=pl.BlockSpec((BLOCK_R, LANE), lambda step: (step, 0)),
        ),
        compiler_params=pltpu.CompilerParams(
            dimension_semantics=("parallel",),
            vmem_limit_bytes=_TILED_VMEM_LIMIT),
    )(inv, x2d)
    return y2d, norm


# -----------------------------------------------------------------------------------
# Dispatcher
# -----------------------------------------------------------------------------------
@partial(jax.jit, static_argnames=("force_tiled",))
def tensor_div(x, force_tiled=False):
    """Pallas equivalent of func.tensor_div: returns (x / ||x||_F, ||x||_F)."""
    orig_shape = x.shape
    out_dtype = x.dtype
    n = x.size
    if n == 0:
        return x, jnp.float32(0.0)

    lane_aligned = (n % LANE == 0)

    if (not force_tiled) and (n * 4 <= _FUSED_MAX_F32_BYTES):
        # ---------------- fused single-kernel path (2N HBM traffic) ----------------
        if lane_aligned:
            xv = x.reshape(n // LANE, LANE)      # free, lane-dense view
        elif x.ndim >= 2:
            xv = x                               # whole-array single block, no copies
        else:
            xv = x.reshape(1, n)
        y, norm = _fused_div(xv, out_dtype)
        return y.reshape(orig_shape), norm

    # ---------------- two-pass tiled path (large tensors, 3N traffic) ----------------
    if lane_aligned:
        x2d = x.reshape(n // LANE, LANE)         # free view; no padding copy
        y2d, norm = _tiled_div_2d(x2d, out_dtype)
        return y2d.reshape(orig_shape), norm

    # TODO(synk): rare ragged case (n % 128 != 0) on a large tensor still pays one pad
    # and one slice copy; a fully copy-free version would need 1-D tail blocks.
    pad = (-n) % LANE
    flat = jnp.pad(x.reshape(-1), (0, pad))      # zeros don't perturb sum(x^2)
    y2d, norm = _tiled_div_2d(flat.reshape(-1, LANE), out_dtype)
    y = y2d.reshape(-1)[:n].reshape(orig_shape)
    return y, norm


class LayerDiv:
    """JAX/Pallas port of layer/TNRlayer.py::LayerDiv (no parameters)."""

    def __init__(self):
        self.norm = None

    def __call__(self, x):
        x, self.norm = tensor_div(x)
        return x


if __name__ == "__main__":
    key = jax.random.PRNGKey(0)
    k1, k2, k3 = jax.random.split(key, 3)

    # Small, module-consistent shape -> exercises the fused single-kernel path.
    x = jax.random.normal(k1, (2, 4, 16, 16), dtype=jnp.float32)
    layer = LayerDiv()
    y = jax.block_until_ready(layer(x))
    norm = jax.block_until_ready(layer.norm)
    ref_norm = jnp.sqrt(jnp.sum(x.astype(jnp.float32) ** 2))
    ref_y = x / ref_norm
    assert jnp.allclose(norm, ref_norm, rtol=1e-6, atol=1e-6)
    assert jnp.allclose(y, ref_y, rtol=1e-6, atol=1e-6)

    # Force the tiled two-pass path on a ragged row count: exercises tail masking,
    # the odd-block phantom step, and the 2-way cross-core pass-1 split.
    x_m = jax.random.normal(k2, (10, 16, 125, 128), dtype=jnp.float32)  # R=20000, NT=3
    y_m, norm_m = tensor_div(x_m, force_tiled=True)
    y_m = jax.block_until_ready(y_m)
    ref_norm_m = jnp.sqrt(jnp.sum(x_m.astype(jnp.float32) ** 2))
    assert jnp.allclose(norm_m, ref_norm_m, rtol=1e-5, atol=1e-5)
    assert jnp.allclose(y_m, x_m / ref_norm_m, rtol=1e-5, atol=1e-5)

    # Large input -> dispatcher picks the tiled path on its own (exact block multiple).
    x_big = jax.random.normal(k3, (16, 64, 64, 64), dtype=jnp.float32)
    y_big, norm_big = tensor_div(x_big)
    y_big = jax.block_until_ready(y_big)
    ref_norm_big = jnp.sqrt(jnp.sum(x_big.astype(jnp.float32) ** 2))
    assert jnp.allclose(norm_big, ref_norm_big, rtol=1e-5, atol=1e-5)
    assert jnp.allclose(y_big, x_big / ref_norm_big, rtol=1e-5, atol=1e-5)

    print("KERNEL_OK")
</pallas_src>

<mosaic_0001>
module attributes {stable_mosaic.version = 11 : i64} {
  func.func @_fused_kernel(%arg0: i32, %arg1: memref<16x128xf32, #tpu.memory_space<vmem>>, %arg2: memref<16x128xf32, #tpu.memory_space<vmem>>, %arg3: memref<1x1xf32, #tpu.memory_space<smem>>) attributes {dimension_semantics = [#tpu.dimension_semantics<arbitrary>], iteration_bounds = array<i64: 1>, scalar_prefetch = 0 : i64, scratch_operands = 0 : i64, tpu.core_type = #tpu.core_type<tc>, window_params = [{pipeline_mode = #tpu.pipeline_mode<synchronous>, transform_indices = @transform_0, window_bounds = array<i64: 16, 128>}, {pipeline_mode = #tpu.pipeline_mode<synchronous>, transform_indices = @transform_1, window_bounds = array<i64: 16, 128>}, {transform_indices = @transform_2, window_bounds = array<i64: 1, 1>}]} {
    %c0 = arith.constant 0 : index
    %c0_0 = arith.constant 0 : index
    %0 = vector.load %arg1[%c0, %c0_0] : memref<16x128xf32, #tpu.memory_space<vmem>>, vector<16x128xf32>
    %1 = arith.mulf %0, %0 : vector<16x128xf32>
    %2 = vector.shape_cast %1 : vector<16x128xf32> to vector<1x16x128xf32>
    %cst = arith.constant dense<0.000000e+00> : vector<1xf32>
    %3 = vector.multi_reduction <add>, %2, %cst [1, 2] : vector<1x16x128xf32> to vector<1xf32>
    %4 = vector.shape_cast %3 : vector<1xf32> to vector<1x1x1xf32>
    %5 = vector.extract %4[0, 0, 0] : f32 from vector<1x1x1xf32>
    %6 = math.sqrt %5 : f32
    %c0_1 = arith.constant 0 : index
    %c0_2 = arith.constant 0 : index
    %7 = memref.load %arg3[%c0_1, %c0_2] : memref<1x1xf32, #tpu.memory_space<smem>>
    memref.store %6, %arg3[%c0_1, %c0_2] : memref<1x1xf32, #tpu.memory_space<smem>>
    %cst_3 = arith.constant 1.000000e+00 : f32
    %8 = arith.divf %cst_3, %6 : f32
    %c0_4 = arith.constant 0 : index
    %c0_5 = arith.constant 0 : index
    %9 = vector.load %arg1[%c0_4, %c0_5] : memref<16x128xf32, #tpu.memory_space<vmem>>, vector<16x128xf32>
    %10 = vector.broadcast %8 : f32 to vector<16x128xf32>
    %11 = arith.mulf %9, %10 : vector<16x128xf32>
    %c0_6 = arith.constant 0 : index
    %c0_7 = arith.constant 0 : index
    %12 = vector.load %arg2[%c0_6, %c0_7] : memref<16x128xf32, #tpu.memory_space<vmem>>, vector<16x128xf32>
    tpu.vector_store %arg2[%c0_6, %c0_7], %11 {strides = array<i32>} : memref<16x128xf32, #tpu.memory_space<vmem>>, vector<16x128xf32>,
    return
  }
  func.func @transform_0(%arg0: i32) -> (i32, i32) {
    %c0_i32 = arith.constant 0 : i32
    %c0_i32_0 = arith.constant 0 : i32
    %c0_i32_1 = arith.constant 0 : i32
    return %c0_i32, %c0_i32_0 : i32, i32
  }
  func.func @transform_1(%arg0: i32) -> (i32, i32) {
    %c0_i32 = arith.constant 0 : i32
    %c0_i32_0 = arith.constant 0 : i32
    %c0_i32_1 = arith.constant 0 : i32
    return %c0_i32, %c0_i32_0 : i32, i32
  }
  func.func @transform_2(%arg0: i32) -> (i32, i32) {
    %c0_i32 = arith.constant 0 : i32
    %c0_i32_0 = arith.constant 0 : i32
    %c0_i32_1 = arith.constant 0 : i32
    return %c0_i32, %c0_i32_0 : i32, i32
  }
}

</mosaic_0001>

<bundles_post_ra>
// kernel: tensor_div.1
= control target key start
LH: loop header
LB: loop body
LE: loop exit
PB: predicated region body
PF: predicated region fallthrough
CT: control target
= control target key end

     0   :  { %s126_s0 = inlined_call_operand.vmem [shape: f32[16,128], index: 0, kind: input, shape index: {}]   ;;  %s127_s1 = inlined_call_operand.vmem [shape: f32[16,128], index: 1, kind: output, shape index: {0}]   ;;  %s128_s2 = inlined_call_operand.hbm [shape: f32[1,1], index: 2, kind: output, shape index: {1}]  }
   0x1   :  { %v11_v0 = vld [vmem:[%s126_s0] sm:$0xff]  ;;  %v12_v1 = vld [vmem:[%s126_s0 + $0x8] sm:$0xff] }
   0x2   :  { %8 = vsyncpa [#allocation3], 0  ;;  %v13_v2 = vmul.f32 %v11_v0, %v11_v0  ;;  %v14_v3 = vmul.f32 %v12_v1, %v12_v1  ;;  %s74_s16 = scalar_lea.hbm %s128_s2, 16 }
   0x3   :  { %p75_p0 = scmp.ne.s32.totalorder %s128_s2, %s74_s16  ;;  %p78_p1 = scmp.lt.u32.totalorder %s74_s16, %s128_s2 }
   0x4   :  { %v15_v4 = vadd.f32 %v14_v3, %v13_v2 }
   0x5   :  { %p80_p2 = pnand %p78_p1, %p75_p0 }
   0x6   :  { %16 = vadd.xlane.f32.xlu0 %v15_v4 }
  0x93   :  { %v17_v5 = vpop.xlane.xlu0 %16 }
  0x94   :  { %v18_v6 = vrot.slane %v17_v5, 4 }
  0x96   :  { %v19_v7 = vadd.f32 %v18_v6, %v17_v5 }
  0x98   :  { %v20_v8 = vrot.slane %v19_v7, 2 }
  0x9a   :  { %v21_v9 = vadd.f32 %v20_v8, %v19_v7 }
  0x9c   :  { %v22_v10 = vrot.slane %v21_v9, 1 }
  0x9e   :  { %v23_v11 = vadd.f32 %v22_v10, %v21_v9 }
  0xa0   :  { %63 = vpush %v23_v11 }
  0xd1   :  { %s64_s13 = spop %63 }
  0xd2   :  { %v25_v12 = vstv %s64_s13 }
  0xd3   :  { %70 = vrsqrt.f32 %v25_v12  ;;  %vm28_vm0 = vcmp.eq.f32.partialorder %v25_v12, inf  ;;  %v31_v15 = vand.u32 2147483648, %v25_v12  ;;  %vm30_vm1 = vcmp.eq.f32.partialorder %v25_v12, 0.0 }
  0xdd   :  { %v71_v13 = vpop.eup %70 }
  0xde   :  { %v27_v14 = vmul.f32 %v71_v13, %v25_v12 }
  0xe0   :  { %v29_v16 = vsel %vm28_vm0, %v25_v12, %v27_v14 }
  0xe1   :  { %v32_v17 = vsel %vm30_vm1, %v31_v15, %v29_v16 }
  0xe2   :  { %65 = vpush %v32_v17 }
 0x113   :  { %s66_s0 = spop %65 }
 0x114   :  { %v36_v18 = vstv %s66_s0  ;;  %35 = sst [smem:[#allocation2]] %s66_s0 }
 0x115   :  { %72 = vrcp.f32 %v36_v18 }
 0x116   :  { %83 = shalt.err (!%p80_p2)
}
 0x117   :  { %s86_s21 = smov [#allocation2]  }
 0x118   :  { %55 = dma.smem_to_hbm %s86_s21, 16, %s128_s2, [#allocation3]  }
 0x11f   :  { %v73_v19 = vpop.eup %72 }
 0x120   :  { %67 = vpush %v73_v19 }
 0x151   :  { %s68_s24 = spop %67 }
 0x152   :  { %v41_v20 = vstv %s68_s24 }
 0x153   :  { %v42_v21 = vmul.f32 %v41_v20, %v11_v0  ;;  %v43_v22 = vmul.f32 %v41_v20, %v12_v1 }
 0x155   :  { %44 = vst [vmem:[%s127_s1] sm:$0xff] %v42_v21  ;;  %45 = vst [vmem:[%s127_s1 + $0x8] sm:$0xff] %v43_v22 }
 0x156   :  { %84 = dma.done.wait [#allocation3], 16  }
 0x157   :  { %85 = vsyncadd [#allocation3], 4294967280 }
 0x158   :  { %61 = sfence }
 0x159   :  { %62 = vsyncpa [#allocation3], 1 }

</bundles_post_ra>
